<compile_context>
chip_gen: v7x
topology: tpu7x:2x2x1
jax: 0.10.0
libtpu: 0.0.40
codegen_flags: <defaults>
</compile_context>

<pallas_src>
import functools

import jax
import jax.numpy as jnp
from jax import lax
from jax.experimental import pallas as pl
from jax.experimental.pallas import tpu as pltpu


def _bart_encoder_attn_kernel(x_ref, wqkv_ref, bqkv_ref, wout_ref, bout_ref,
                              o_ref, q_scr, k_scr, v_scr,
                              *, num_heads, head_dim, q_tile):
    # x_ref:    (T, D)   input dtype (cast to bf16 in-kernel, once per row)
    # wqkv_ref: (D, 3D)  bf16, contraction-major; Q columns pre-scaled
    # bqkv_ref: (1, 3D)  f32; Q part pre-scaled
    # wout_ref: (D, D)   bf16, contraction-major
    # bout_ref: (1, D)   f32
    # o_ref:    (q_tile, D)
    # q_scr/k_scr/v_scr: (T, D) bf16 VMEM scratch, persistent across q steps
    T, D = x_ref.shape
    H, hd = num_heads, head_dim
    qi = pl.program_id(1)

    # ---- Q/K/V projection ONCE per batch row (q axis is "arbitrary", so the
    #      scratch written here is reused by every query tile of this row). --
    @pl.when(qi == 0)
    def _():
        x_bf = x_ref[...].astype(jnp.bfloat16)                    # (T, D)
        for p, dst in enumerate((q_scr, k_scr, v_scr)):
            w_p = wqkv_ref[:, p * D:(p + 1) * D]                  # (D, D) bf16
            b_p = bqkv_ref[:, p * D:(p + 1) * D]                  # (1, D) f32
            r = jnp.dot(x_bf, w_p, preferred_element_type=jnp.float32) + b_p
            dst[...] = r.astype(jnp.bfloat16)

    # ---- this query tile (softmax scaling already folded into Q weights) ---
    q_start = pl.multiple_of(qi * q_tile, q_tile)
    q_all = q_scr[pl.ds(q_start, q_tile), :]                      # (tq, D) bf16

    # ---- per-head attention; heads are static lane slices, no transposes ---
    ctx_parts = []
    for h in range(H):
        sl = slice(h * hd, (h + 1) * hd)
        q_h = q_all[:, sl]                                        # (tq, hd)
        k_h = k_scr[:, sl]                                        # (T, hd)
        v_h = v_scr[:, sl]                                        # (T, hd)
        # scores_h = q_h @ k_h^T  (contract last dims; no explicit transpose)
        s = lax.dot_general(q_h, k_h, (((1,), (1,)), ((), ())),
                            preferred_element_type=jnp.float32)   # (tq, T) f32
        m = jnp.max(s, axis=-1, keepdims=True)
        e = jnp.exp(s - m)                                        # f32
        l = jnp.sum(e, axis=-1, keepdims=True)                    # (tq, 1) f32
        # Deferred normalization: scale the (tq, hd) PV result, not the
        # (tq, T) probabilities.  Reciprocal runs on the EUP slot.
        pv = jnp.dot(e.astype(jnp.bfloat16), v_h,
                     preferred_element_type=jnp.float32)          # (tq, hd)
        ctx_parts.append(
            (pv * pl.reciprocal(l, approx=True)).astype(jnp.bfloat16))

    # ---- merge heads in-register, then ONE K=D output projection -----------
    ctx = jnp.concatenate(ctx_parts, axis=-1)                     # (tq, D) bf16
    out = jnp.dot(ctx, wout_ref[...], preferred_element_type=jnp.float32)
    o_ref[...] = (out + bout_ref[...]).astype(o_ref.dtype)


def _vmem_limit_bytes():
    # ~3/4 of physical VMEM: ~96 MiB on v5e/v6e (128 MiB), ~48 MiB on v7x
    # (64 MiB).  Fall back to a safe 64 MiB if the query is unavailable.
    try:
        cap = pltpu.get_tpu_info().vmem_capacity_bytes
        return int(min(100 * 2**20, (cap * 3) // 4))
    except Exception:
        return 64 * 2**20


def bart_encoder_attention(hidden_states, w_qkv, b_qkv, w_out, b_out,
                           *, num_heads, q_tile=256):
    """hidden_states: (B, T, D).  w_qkv: (3D, D), w_out: (D, D) (PyTorch layout).

    Returns (B, T, D) in hidden_states.dtype.
    """
    B, T, D = hidden_states.shape
    assert D % num_heads == 0, "embed_dim must be divisible by num_heads"
    head_dim = D // num_heads

    q_tile = min(q_tile, T)
    assert T % q_tile == 0, "T must be divisible by the query tile size"
    nq = T // q_tile

    scaling = float(head_dim) ** -0.5

    # One-time, weight-sized relayout: PyTorch [out, in] -> contraction-major
    # [in, out] bf16, with the softmax scaling folded into the Q slice.
    # (No standalone activation cast: x is cast in-kernel.)
    wqkv_t = jnp.transpose(w_qkv.at[:D].multiply(scaling)).astype(jnp.bfloat16)  # (D, 3D)
    wout_t = jnp.transpose(w_out).astype(jnp.bfloat16)                            # (D, D)
    bqkv2 = b_qkv.at[:D].multiply(scaling).reshape(1, 3 * D).astype(jnp.float32)
    bout2 = b_out.reshape(1, D).astype(jnp.float32)

    kernel = functools.partial(_bart_encoder_attn_kernel,
                               num_heads=num_heads, head_dim=head_dim,
                               q_tile=q_tile)

    return pl.pallas_call(
        kernel,
        out_shape=jax.ShapeDtypeStruct((B, T, D), hidden_states.dtype),
        grid_spec=pltpu.PrefetchScalarGridSpec(
            num_scalar_prefetch=0,
            grid=(B, nq),
            in_specs=[
                # x: full row, indexed only by b -> not re-DMA'd across q steps.
                pl.BlockSpec((None, T, D), lambda b, q: (b, 0, 0)),
                pl.BlockSpec((D, 3 * D), lambda b, q: (0, 0)),     # W_qkv^T (Q scaled)
                pl.BlockSpec((1, 3 * D), lambda b, q: (0, 0)),     # b_qkv
                pl.BlockSpec((D, D), lambda b, q: (0, 0)),         # W_out^T
                pl.BlockSpec((1, D), lambda b, q: (0, 0)),         # b_out
            ],
            out_specs=pl.BlockSpec((None, q_tile, D), lambda b, q: (b, q, 0)),
            scratch_shapes=[
                pltpu.VMEM((T, D), jnp.bfloat16),   # Q (scaled), per batch row
                pltpu.VMEM((T, D), jnp.bfloat16),   # K
                pltpu.VMEM((T, D), jnp.bfloat16),   # V
            ],
        ),
        compiler_params=pltpu.CompilerParams(
            # The q axis MUST be "arbitrary": Q/K/V scratch written at qi==0
            # carries across the remaining query tiles of the same batch row.
            # Batch stays "parallel" for megacore sharding (keep B>=2 on v7x).
            dimension_semantics=("parallel", "arbitrary"),
            vmem_limit_bytes=_vmem_limit_bytes()),
    )(hidden_states, wqkv_t, bqkv2, wout_t, bout2)


def _reference(hidden_states, w_qkv, b_qkv, w_out, b_out, *, num_heads):
    B, T, D = hidden_states.shape
    hd = D // num_heads
    qkv = jnp.einsum('btd,od->bto', hidden_states, w_qkv) + b_qkv
    q, k, v = qkv[..., :D], qkv[..., D:2 * D], qkv[..., 2 * D:]
    qh = q.reshape(B, T, num_heads, hd).transpose(0, 2, 1, 3)
    kh = k.reshape(B, T, num_heads, hd).transpose(0, 2, 1, 3)
    vh = v.reshape(B, T, num_heads, hd).transpose(0, 2, 1, 3)
    s = jnp.einsum('bhtd,bhsd->bhts', qh, kh) * (hd ** -0.5)
    p = jax.nn.softmax(s, axis=-1)
    ctx = jnp.einsum('bhts,bhsd->bhtd', p, vh)
    ctx = ctx.transpose(0, 2, 1, 3).reshape(B, T, D)
    return jnp.einsum('btd,od->bto', ctx, w_out) + b_out


if __name__ == "__main__":
    B, T, D, H = 2, 8, 32, 4   # batch, seq len, embed_dim, num_heads

    key = jax.random.PRNGKey(0)
    k_x, k_wqkv, k_bqkv, k_wout, k_bout = jax.random.split(key, 5)

    x = jax.random.normal(k_x, (B, T, D), dtype=jnp.float32)
    # QKVParallelLinear: weight (3*D, D), bias (3*D,)
    w_qkv = jax.random.normal(k_wqkv, (3 * D, D), dtype=jnp.float32) * 0.05
    b_qkv = jax.random.normal(k_bqkv, (3 * D,), dtype=jnp.float32) * 0.05
    # RowParallelLinear out_proj: weight (D, D), bias (D,)
    w_out = jax.random.normal(k_wout, (D, D), dtype=jnp.float32) * 0.05
    b_out = jax.random.normal(k_bout, (D,), dtype=jnp.float32) * 0.05

    out = bart_encoder_attention(x, w_qkv, b_qkv, w_out, b_out, num_heads=H)
    out = jax.block_until_ready(out)

    ref = _reference(x, w_qkv, b_qkv, w_out, b_out, num_heads=H)
    assert out.shape == (B, T, D)
    err = float(jnp.max(jnp.abs(out - ref)))
    # bf16 operands with f32 accumulation + approx reciprocal -> loose-ish
    # tolerance vs. the f32 reference.
    assert err < 2e-2, f"max err {err}"

    print("KERNEL_OK")
</pallas_src>

<mosaic_0001>
module attributes {stable_mosaic.version = 11 : i64} {
  func.func @_bart_encoder_attn_kernel(%arg0: i32, %arg1: i32, %arg2: memref<1x8x32xf32, #tpu.memory_space<vmem>>, %arg3: memref<32x96xbf16, #tpu.memory_space<vmem>>, %arg4: memref<1x96xf32, #tpu.memory_space<vmem>>, %arg5: memref<32x32xbf16, #tpu.memory_space<vmem>>, %arg6: memref<1x32xf32, #tpu.memory_space<vmem>>, %arg7: memref<1x8x32xf32, #tpu.memory_space<vmem>>, %arg8: memref<8x32xbf16, #tpu.memory_space<vmem>>, %arg9: memref<8x32xbf16, #tpu.memory_space<vmem>>, %arg10: memref<8x32xbf16, #tpu.memory_space<vmem>>) attributes {dimension_semantics = [#tpu.dimension_semantics<parallel>, #tpu.dimension_semantics<arbitrary>], iteration_bounds = array<i64: 2, 1>, scalar_prefetch = 0 : i64, scratch_operands = 3 : i64, tpu.core_type = #tpu.core_type<tc>, window_params = [{transform_indices = @transform_0, window_bounds = array<i64: 1, 8, 32>}, {pipeline_mode = #tpu.pipeline_mode<synchronous>, transform_indices = @transform_1, window_bounds = array<i64: 32, 96>}, {pipeline_mode = #tpu.pipeline_mode<synchronous>, transform_indices = @transform_2, window_bounds = array<i64: 1, 96>}, {pipeline_mode = #tpu.pipeline_mode<synchronous>, transform_indices = @transform_3, window_bounds = array<i64: 32, 32>}, {pipeline_mode = #tpu.pipeline_mode<synchronous>, transform_indices = @transform_4, window_bounds = array<i64: 1, 32>}, {transform_indices = @transform_5, window_bounds = array<i64: 1, 8, 32>}]} {
    %c0_i32 = arith.constant 0 : i32
    %0 = arith.cmpi eq, %arg1, %c0_i32 : i32
    %1 = arith.extui %0 : i1 to i32
    %c0_i32_0 = arith.constant 0 : i32
    %2 = arith.cmpi ne, %1, %c0_i32_0 : i32
    scf.if %2 {
      %c0_37 = arith.constant 0 : index
      %c0_38 = arith.constant 0 : index
      %c0_39 = arith.constant 0 : index
      %84 = vector.load %arg2[%c0_37, %c0_38, %c0_39] : memref<1x8x32xf32, #tpu.memory_space<vmem>>, vector<1x8x32xf32>
      %85 = vector.shape_cast %84 : vector<1x8x32xf32> to vector<8x32xf32>
      %86 = arith.truncf %85 : vector<8x32xf32> to vector<8x32xbf16>
      %c0_40 = arith.constant 0 : index
      %c0_41 = arith.constant 0 : index
      %87 = vector.load %arg3[%c0_40, %c0_41] : memref<32x96xbf16, #tpu.memory_space<vmem>>, vector<32x32xbf16>
      %c0_42 = arith.constant 0 : index
      %c0_43 = arith.constant 0 : index
      %88 = vector.load %arg4[%c0_42, %c0_43] : memref<1x96xf32, #tpu.memory_space<vmem>>, vector<1x32xf32>
      %cst_44 = arith.constant dense<0.000000e+00> : vector<8x32xf32>
      %89 = tpu.matmul %86, %87, %cst_44 {dimension_numbers = #tpu.dot_dimension_numbers<[1], [0], [0], [1], [0, 0, 1, 1], [], []>} : vector<8x32xbf16>, vector<32x32xbf16>, vector<8x32xf32> -> vector<8x32xf32>
      %90 = vector.broadcast %88 : vector<1x32xf32> to vector<8x32xf32>
      %91 = arith.addf %89, %90 : vector<8x32xf32>
      %92 = arith.truncf %91 : vector<8x32xf32> to vector<8x32xbf16>
      %c0_45 = arith.constant 0 : index
      %c0_46 = arith.constant 0 : index
      %93 = vector.load %arg8[%c0_45, %c0_46] : memref<8x32xbf16, #tpu.memory_space<vmem>>, vector<8x32xbf16>
      tpu.vector_store %arg8[%c0_45, %c0_46], %92 {strides = array<i32>} : memref<8x32xbf16, #tpu.memory_space<vmem>>, vector<8x32xbf16>,
      %c0_47 = arith.constant 0 : index
      %c32 = arith.constant 32 : index
      %94 = vector.load %arg3[%c0_47, %c32] : memref<32x96xbf16, #tpu.memory_space<vmem>>, vector<32x32xbf16>
      %c0_48 = arith.constant 0 : index
      %c32_49 = arith.constant 32 : index
      %95 = vector.load %arg4[%c0_48, %c32_49] : memref<1x96xf32, #tpu.memory_space<vmem>>, vector<1x32xf32>
      %cst_50 = arith.constant dense<0.000000e+00> : vector<8x32xf32>
      %96 = tpu.matmul %86, %94, %cst_50 {dimension_numbers = #tpu.dot_dimension_numbers<[1], [0], [0], [1], [0, 0, 1, 1], [], []>} : vector<8x32xbf16>, vector<32x32xbf16>, vector<8x32xf32> -> vector<8x32xf32>
      %97 = vector.broadcast %95 : vector<1x32xf32> to vector<8x32xf32>
      %98 = arith.addf %96, %97 : vector<8x32xf32>
      %99 = arith.truncf %98 : vector<8x32xf32> to vector<8x32xbf16>
      %c0_51 = arith.constant 0 : index
      %c0_52 = arith.constant 0 : index
      %100 = vector.load %arg9[%c0_51, %c0_52] : memref<8x32xbf16, #tpu.memory_space<vmem>>, vector<8x32xbf16>
      tpu.vector_store %arg9[%c0_51, %c0_52], %99 {strides = array<i32>} : memref<8x32xbf16, #tpu.memory_space<vmem>>, vector<8x32xbf16>,
      %c0_53 = arith.constant 0 : index
      %c64 = arith.constant 64 : index
      %101 = vector.load %arg3[%c0_53, %c64] : memref<32x96xbf16, #tpu.memory_space<vmem>>, vector<32x32xbf16>
      %c0_54 = arith.constant 0 : index
      %c64_55 = arith.constant 64 : index
      %102 = vector.load %arg4[%c0_54, %c64_55] : memref<1x96xf32, #tpu.memory_space<vmem>>, vector<1x32xf32>
      %cst_56 = arith.constant dense<0.000000e+00> : vector<8x32xf32>
      %103 = tpu.matmul %86, %101, %cst_56 {dimension_numbers = #tpu.dot_dimension_numbers<[1], [0], [0], [1], [0, 0, 1, 1], [], []>} : vector<8x32xbf16>, vector<32x32xbf16>, vector<8x32xf32> -> vector<8x32xf32>
      %104 = vector.broadcast %102 : vector<1x32xf32> to vector<8x32xf32>
      %105 = arith.addf %103, %104 : vector<8x32xf32>
      %106 = arith.truncf %105 : vector<8x32xf32> to vector<8x32xbf16>
      %c0_57 = arith.constant 0 : index
      %c0_58 = arith.constant 0 : index
      %107 = vector.load %arg10[%c0_57, %c0_58] : memref<8x32xbf16, #tpu.memory_space<vmem>>, vector<8x32xbf16>
      tpu.vector_store %arg10[%c0_57, %c0_58], %106 {strides = array<i32>} : memref<8x32xbf16, #tpu.memory_space<vmem>>, vector<8x32xbf16>,
    } else {
    }
    %c8_i32 = arith.constant 8 : i32
    %3 = arith.muli %arg1, %c8_i32 : i32
    %4 = tpu.assume_multiple %3, 8 : i32
    %5 = arith.index_cast %4 : i32 to index
    %c0 = arith.constant 0 : index
    %6 = vector.load %arg8[%5, %c0] : memref<8x32xbf16, #tpu.memory_space<vmem>>, vector<8x32xbf16>
    %7 = vector.extract_strided_slice %6 {offsets = [0, 0], sizes = [8, 8], strides = [1, 1]} : vector<8x32xbf16> to vector<8x8xbf16>
    %c0_1 = arith.constant 0 : index
    %c0_2 = arith.constant 0 : index
    %8 = vector.load %arg9[%c0_1, %c0_2] : memref<8x32xbf16, #tpu.memory_space<vmem>>, vector<8x8xbf16>
    %c0_3 = arith.constant 0 : index
    %c0_4 = arith.constant 0 : index
    %9 = vector.load %arg10[%c0_3, %c0_4] : memref<8x32xbf16, #tpu.memory_space<vmem>>, vector<8x8xbf16>
    %cst = arith.constant dense<0.000000e+00> : vector<8x8xf32>
    %10 = tpu.matmul %7, %8, %cst {dimension_numbers = #tpu.dot_dimension_numbers<[1], [1], [0], [0], [0, 0, 1, 0], [], []>} : vector<8x8xbf16>, vector<8x8xbf16>, vector<8x8xf32> -> vector<8x8xf32>
    %cst_5 = arith.constant dense<0xFF800000> : vector<8xf32>
    %11 = vector.multi_reduction <maximumf>, %10, %cst_5 [1] : vector<8x8xf32> to vector<8xf32>
    %12 = vector.shape_cast %11 : vector<8xf32> to vector<8x1xf32>
    %13 = vector.broadcast %12 : vector<8x1xf32> to vector<8x8xf32>
    %14 = arith.subf %10, %13 : vector<8x8xf32>
    %15 = math.exp %14 : vector<8x8xf32>
    %cst_6 = arith.constant dense<0.000000e+00> : vector<8xf32>
    %16 = vector.multi_reduction <add>, %15, %cst_6 [1] : vector<8x8xf32> to vector<8xf32>
    %17 = vector.shape_cast %16 : vector<8xf32> to vector<8x1xf32>
    %18 = arith.truncf %15 : vector<8x8xf32> to vector<8x8xbf16>
    %cst_7 = arith.constant dense<0.000000e+00> : vector<8x8xf32>
    %19 = tpu.matmul %18, %9, %cst_7 {dimension_numbers = #tpu.dot_dimension_numbers<[1], [0], [0], [1], [0, 0, 1, 1], [], []>} : vector<8x8xbf16>, vector<8x8xbf16>, vector<8x8xf32> -> vector<8x8xf32>
    %20 = tpu.reciprocal %17 {approx = true} : vector<8x1xf32> -> vector<8x1xf32>
    %21 = vector.broadcast %20 : vector<8x1xf32> to vector<8x8xf32>
    %22 = arith.mulf %19, %21 : vector<8x8xf32>
    %23 = arith.truncf %22 : vector<8x8xf32> to vector<8x8xbf16>
    %24 = vector.extract_strided_slice %6 {offsets = [0, 8], sizes = [8, 8], strides = [1, 1]} : vector<8x32xbf16> to vector<8x8xbf16>
    %c0_8 = arith.constant 0 : index
    %c8 = arith.constant 8 : index
    %25 = vector.load %arg9[%c0_8, %c8] : memref<8x32xbf16, #tpu.memory_space<vmem>>, vector<8x8xbf16>
    %c0_9 = arith.constant 0 : index
    %c8_10 = arith.constant 8 : index
    %26 = vector.load %arg10[%c0_9, %c8_10] : memref<8x32xbf16, #tpu.memory_space<vmem>>, vector<8x8xbf16>
    %cst_11 = arith.constant dense<0.000000e+00> : vector<8x8xf32>
    %27 = tpu.matmul %24, %25, %cst_11 {dimension_numbers = #tpu.dot_dimension_numbers<[1], [1], [0], [0], [0, 0, 1, 0], [], []>} : vector<8x8xbf16>, vector<8x8xbf16>, vector<8x8xf32> -> vector<8x8xf32>
    %cst_12 = arith.constant dense<0xFF800000> : vector<8xf32>
    %28 = vector.multi_reduction <maximumf>, %27, %cst_12 [1] : vector<8x8xf32> to vector<8xf32>
    %29 = vector.shape_cast %28 : vector<8xf32> to vector<8x1xf32>
    %30 = vector.broadcast %29 : vector<8x1xf32> to vector<8x8xf32>
    %31 = arith.subf %27, %30 : vector<8x8xf32>
    %32 = math.exp %31 : vector<8x8xf32>
    %cst_13 = arith.constant dense<0.000000e+00> : vector<8xf32>
    %33 = vector.multi_reduction <add>, %32, %cst_13 [1] : vector<8x8xf32> to vector<8xf32>
    %34 = vector.shape_cast %33 : vector<8xf32> to vector<8x1xf32>
    %35 = arith.truncf %32 : vector<8x8xf32> to vector<8x8xbf16>
    %cst_14 = arith.constant dense<0.000000e+00> : vector<8x8xf32>
    %36 = tpu.matmul %35, %26, %cst_14 {dimension_numbers = #tpu.dot_dimension_numbers<[1], [0], [0], [1], [0, 0, 1, 1], [], []>} : vector<8x8xbf16>, vector<8x8xbf16>, vector<8x8xf32> -> vector<8x8xf32>
    %37 = tpu.reciprocal %34 {approx = true} : vector<8x1xf32> -> vector<8x1xf32>
    %38 = vector.broadcast %37 : vector<8x1xf32> to vector<8x8xf32>
    %39 = arith.mulf %36, %38 : vector<8x8xf32>
    %40 = arith.truncf %39 : vector<8x8xf32> to vector<8x8xbf16>
    %41 = vector.extract_strided_slice %6 {offsets = [0, 16], sizes = [8, 8], strides = [1, 1]} : vector<8x32xbf16> to vector<8x8xbf16>
    %c0_15 = arith.constant 0 : index
    %c16 = arith.constant 16 : index
    %42 = vector.load %arg9[%c0_15, %c16] : memref<8x32xbf16, #tpu.memory_space<vmem>>, vector<8x8xbf16>
    %c0_16 = arith.constant 0 : index
    %c16_17 = arith.constant 16 : index
    %43 = vector.load %arg10[%c0_16, %c16_17] : memref<8x32xbf16, #tpu.memory_space<vmem>>, vector<8x8xbf16>
    %cst_18 = arith.constant dense<0.000000e+00> : vector<8x8xf32>
    %44 = tpu.matmul %41, %42, %cst_18 {dimension_numbers = #tpu.dot_dimension_numbers<[1], [1], [0], [0], [0, 0, 1, 0], [], []>} : vector<8x8xbf16>, vector<8x8xbf16>, vector<8x8xf32> -> vector<8x8xf32>
    %cst_19 = arith.constant dense<0xFF800000> : vector<8xf32>
    %45 = vector.multi_reduction <maximumf>, %44, %cst_19 [1] : vector<8x8xf32> to vector<8xf32>
    %46 = vector.shape_cast %45 : vector<8xf32> to vector<8x1xf32>
    %47 = vector.broadcast %46 : vector<8x1xf32> to vector<8x8xf32>
    %48 = arith.subf %44, %47 : vector<8x8xf32>
    %49 = math.exp %48 : vector<8x8xf32>
    %cst_20 = arith.constant dense<0.000000e+00> : vector<8xf32>
    %50 = vector.multi_reduction <add>, %49, %cst_20 [1] : vector<8x8xf32> to vector<8xf32>
    %51 = vector.shape_cast %50 : vector<8xf32> to vector<8x1xf32>
    %52 = arith.truncf %49 : vector<8x8xf32> to vector<8x8xbf16>
    %cst_21 = arith.constant dense<0.000000e+00> : vector<8x8xf32>
    %53 = tpu.matmul %52, %43, %cst_21 {dimension_numbers = #tpu.dot_dimension_numbers<[1], [0], [0], [1], [0, 0, 1, 1], [], []>} : vector<8x8xbf16>, vector<8x8xbf16>, vector<8x8xf32> -> vector<8x8xf32>
    %54 = tpu.reciprocal %51 {approx = true} : vector<8x1xf32> -> vector<8x1xf32>
    %55 = vector.broadcast %54 : vector<8x1xf32> to vector<8x8xf32>
    %56 = arith.mulf %53, %55 : vector<8x8xf32>
    %57 = arith.truncf %56 : vector<8x8xf32> to vector<8x8xbf16>
    %58 = vector.extract_strided_slice %6 {offsets = [0, 24], sizes = [8, 8], strides = [1, 1]} : vector<8x32xbf16> to vector<8x8xbf16>
    %c0_22 = arith.constant 0 : index
    %c24 = arith.constant 24 : index
    %59 = vector.load %arg9[%c0_22, %c24] : memref<8x32xbf16, #tpu.memory_space<vmem>>, vector<8x8xbf16>
    %c0_23 = arith.constant 0 : index
    %c24_24 = arith.constant 24 : index
    %60 = vector.load %arg10[%c0_23, %c24_24] : memref<8x32xbf16, #tpu.memory_space<vmem>>, vector<8x8xbf16>
    %cst_25 = arith.constant dense<0.000000e+00> : vector<8x8xf32>
    %61 = tpu.matmul %58, %59, %cst_25 {dimension_numbers = #tpu.dot_dimension_numbers<[1], [1], [0], [0], [0, 0, 1, 0], [], []>} : vector<8x8xbf16>, vector<8x8xbf16>, vector<8x8xf32> -> vector<8x8xf32>
    %cst_26 = arith.constant dense<0xFF800000> : vector<8xf32>
    %62 = vector.multi_reduction <maximumf>, %61, %cst_26 [1] : vector<8x8xf32> to vector<8xf32>
    %63 = vector.shape_cast %62 : vector<8xf32> to vector<8x1xf32>
    %64 = vector.broadcast %63 : vector<8x1xf32> to vector<8x8xf32>
    %65 = arith.subf %61, %64 : vector<8x8xf32>
    %66 = math.exp %65 : vector<8x8xf32>
    %cst_27 = arith.constant dense<0.000000e+00> : vector<8xf32>
    %67 = vector.multi_reduction <add>, %66, %cst_27 [1] : vector<8x8xf32> to vector<8xf32>
    %68 = vector.shape_cast %67 : vector<8xf32> to vector<8x1xf32>
    %69 = arith.truncf %66 : vector<8x8xf32> to vector<8x8xbf16>
    %cst_28 = arith.constant dense<0.000000e+00> : vector<8x8xf32>
    %70 = tpu.matmul %69, %60, %cst_28 {dimension_numbers = #tpu.dot_dimension_numbers<[1], [0], [0], [1], [0, 0, 1, 1], [], []>} : vector<8x8xbf16>, vector<8x8xbf16>, vector<8x8xf32> -> vector<8x8xf32>
    %71 = tpu.reciprocal %68 {approx = true} : vector<8x1xf32> -> vector<8x1xf32>
    %72 = vector.broadcast %71 : vector<8x1xf32> to vector<8x8xf32>
    %73 = arith.mulf %70, %72 : vector<8x8xf32>
    %74 = arith.truncf %73 : vector<8x8xf32> to vector<8x8xbf16>
    %75 = tpu.concatenate %23, %40, %57, %74 in 1 : vector<8x8xbf16>, vector<8x8xbf16>, vector<8x8xbf16>, vector<8x8xbf16> -> vector<8x32xbf16>
    %c0_29 = arith.constant 0 : index
    %c0_30 = arith.constant 0 : index
    %76 = vector.load %arg5[%c0_29, %c0_30] : memref<32x32xbf16, #tpu.memory_space<vmem>>, vector<32x32xbf16>
    %cst_31 = arith.constant dense<0.000000e+00> : vector<8x32xf32>
    %77 = tpu.matmul %75, %76, %cst_31 {dimension_numbers = #tpu.dot_dimension_numbers<[1], [0], [0], [1], [0, 0, 1, 1], [], []>} : vector<8x32xbf16>, vector<32x32xbf16>, vector<8x32xf32> -> vector<8x32xf32>
    %c0_32 = arith.constant 0 : index
    %c0_33 = arith.constant 0 : index
    %78 = vector.load %arg6[%c0_32, %c0_33] : memref<1x32xf32, #tpu.memory_space<vmem>>, vector<1x32xf32>
    %79 = vector.broadcast %78 : vector<1x32xf32> to vector<8x32xf32>
    %80 = arith.addf %77, %79 : vector<8x32xf32>
    %c0_34 = arith.constant 0 : index
    %c0_35 = arith.constant 0 : index
    %c0_36 = arith.constant 0 : index
    %81 = vector.load %arg7[%c0_34, %c0_35, %c0_36] : memref<1x8x32xf32, #tpu.memory_space<vmem>>, vector<1x8x32xf32>
    %82 = vector.shape_cast %81 : vector<1x8x32xf32> to vector<8x32xf32>
    %83 = vector.shape_cast %80 : vector<8x32xf32> to vector<1x8x32xf32>
    tpu.vector_store %arg7[%c0_34, %c0_35, %c0_36], %83 {strides = array<i32>} : memref<1x8x32xf32, #tpu.memory_space<vmem>>, vector<1x8x32xf32>,
    return
  }
  func.func @transform_0(%arg0: i32, %arg1: i32) -> (i32, i32, i32) {
    %c0_i32 = arith.constant 0 : i32
    %c0_i32_0 = arith.constant 0 : i32
    %c0_i32_1 = arith.constant 0 : i32
    return %arg0, %c0_i32, %c0_i32_0 : i32, i32, i32
  }
  func.func @transform_1(%arg0: i32, %arg1: i32) -> (i32, i32) {
    %c0_i32 = arith.constant 0 : i32
    %c0_i32_0 = arith.constant 0 : i32
    %c0_i32_1 = arith.constant 0 : i32
    return %c0_i32, %c0_i32_0 : i32, i32
  }
  func.func @transform_2(%arg0: i32, %arg1: i32) -> (i32, i32) {
    %c0_i32 = arith.constant 0 : i32
    %c0_i32_0 = arith.constant 0 : i32
    %c0_i32_1 = arith.constant 0 : i32
    return %c0_i32, %c0_i32_0 : i32, i32
  }
  func.func @transform_3(%arg0: i32, %arg1: i32) -> (i32, i32) {
    %c0_i32 = arith.constant 0 : i32
    %c0_i32_0 = arith.constant 0 : i32
    %c0_i32_1 = arith.constant 0 : i32
    return %c0_i32, %c0_i32_0 : i32, i32
  }
  func.func @transform_4(%arg0: i32, %arg1: i32) -> (i32, i32) {
    %c0_i32 = arith.constant 0 : i32
    %c0_i32_0 = arith.constant 0 : i32
    %c0_i32_1 = arith.constant 0 : i32
    return %c0_i32, %c0_i32_0 : i32, i32
  }
  func.func @transform_5(%arg0: i32, %arg1: i32) -> (i32, i32, i32) {
    %c0_i32 = arith.constant 0 : i32
    %c0_i32_0 = arith.constant 0 : i32
    return %arg0, %arg1, %c0_i32 : i32, i32, i32
  }
}

</mosaic_0001>

<bundles_post_ra>
// kernel: tpu_custom_call.1
= control target key start
LH: loop header
LB: loop body
LE: loop exit
PB: predicated region body
PF: predicated region fallthrough
CT: control target
= control target key end

     0   :  { %10 = vsyncpa [#allocation6], 0  ;;  %s2172_s0 = inlined_call_operand.hbm [shape: f32[2,8,32], index: 0, kind: input, shape index: {}]   ;;  %s2173_s1 = inlined_call_operand.hbm [shape: bf16[32,96], index: 1, kind: input, shape index: {}]   ;;  %s2174_s2 = inlined_call_operand.hbm [shape: f32[1,96], index: 2, kind: input, shape index: {}]   ;;  %s2175_s3 = inlined_call_operand.hbm [shape: bf16[32,32], index: 3, kind: input, shape index: {}]   ;;  %s2176_s4 = inlined_call_operand.hbm [shape: f32[1,32], index: 4, kind: input, shape index: {}]   ;;  %s2177_s5 = inlined_call_operand.hbm [shape: f32[2,8,32], index: 5, kind: output, shape index: {}]  }
   0x1   :  { %12 = vsyncpa [#allocation6 + $0x1], 0 }
   0x2   :  { %13 = vsyncpa [#allocation9], 0 }
   0x3   :  { %14 = vsyncpa [#allocation12], 0 }
   0x4   :  { %15 = vsyncpa [#allocation7], 0 }
   0x5   :  { %17 = vsyncpa [#allocation7 + $0x1], 0  ;;  %s1783_s18 = smov 0   ;;  %s1785_s19 = smov 0  }
   0x6   :  { %s1787_s20 = smov 0   ;;  %s1789_s21 = smov 0  }
   0x7   :  { %s1791_s22 = smov 0   ;;  %s1793_s23 = smov 0  }
   0x8 LB: > { %s1203_s24 = sadd.s32 4294967295, %s1733_s23   ;;  %p1205_p0 = scmp.ge.s32.totalorder %s1733_s23, 1  ;;  %s1733_s23 = sphi %s1793_s23, %s23_s23   ;;  %s1729_s22 = sphi %s1791_s22, %s2201_s22   ;;  %s1725_s21 = sphi %s1789_s21, %s2200_s21   ;;  %s1721_s20 = sphi %s1787_s20, %s2199_s20   ;;  %s1717_s19 = sphi %s1785_s19, %s2198_s19   ;;  %s1713_s18 = sphi %s1783_s18, %s2197_s18  }
   0x9   : > { %p1817_p1 = scmp.eq.s32.totalorder %s1203_s24, 0  ;;  %p178_p2 = scmp.lt.s32.totalorder %s1733_s23, 3 }
   0xa   : > { %s1735_s27 = smov [#allocation8]   ;;  %s1736_s30 = smov [#allocation11]  }
   0xb   : > { %s2182_s25 = scalar_select %p1817_p1, 1, 0 }
   0xc   : > { %p1822_p3 = pnand %p1205_p0, %p178_p2  ;;  %s190_s28 = sshll.u32 %s1735_s27, 4  ;;  %s1826_s28 = int_to_ptr.vmem [resolvable:$true] %s190_s28 }
   0xd   : > { %s214_s6 = sshll.u32 %s1736_s30, 4  ;;  %s1737_s7 = smov [#allocation10]   ;;  %s1837_s6 = int_to_ptr.vmem [resolvable:$true] %s214_s6 }
   0xe   : > { %s2183_s26 = scalar_select %p1822_p3, 1, 0 }
   0xf   : > { %p1379_p4 = pneg %p1822_p3  ;;  %s1839_s8 = sshll.u32 %s1737_s7, 4  ;;  %s205_s8 = int_to_ptr.vmem [resolvable:$true] %s1839_s8 }
  0x10   : > { %s1501_s11 = scalar_lea.hbm %s2173_s1, 256 }
  0x11   : > { %p1833_p6 = pnand %p1379_p4, %p1817_p1  ;;  %p1502_p7 = scmp.ne.s32.totalorder %s2173_s1, %s1501_s11 }
  0x12   : > { %p1508_p11 = scmp.lt.u32.totalorder %s1501_s11, %s2173_s1 }
  0x13   : > { %p1849_p8 = pneg %p1833_p6 }
  0x15   : > { %p1504_p9 = pnand %p1849_p8, %p1502_p7 }
  0x17   : > { %p1505_p10 = pneg %p1504_p9 }
  0x19   : > { %p1510_p12 = pnand %p1508_p11, %p1505_p10 }
  0x1b   : > { %1513 = shalt.err (!%p1510_p12)
}
  0x1c   : > { %s1514_s17 = scalar_lea.vmem %s1826_s28, 256  ;;  %p1522_p4 = scmp.lt.s32.totalorder %s1826_s28, %s1826_s28 }
  0x1d   : > { %p1515_p13 = scmp.ne.s32.totalorder %s1826_s28, %s1514_s17  ;;  %p1523_p5 = scmp.lt.s32.totalorder %s1514_s17, %s1514_s17 }
  0x1f   : > { %p1517_p0 = pnand %p1515_p13, %p1849_p8  ;;  %p1524_p7 = por %p1523_p5, %p1522_p4 }
  0x21   : > { %p1518_p2 = pneg %p1517_p0 }
  0x23   : > { %p1525_p9 = pnand %p1524_p7, %p1518_p2 }
  0x25   : > { %1528 = shalt.err (!%p1525_p9)
}
  0x26   : > { %s1738_s27 = smov 64   ;;  %s1739_s30 = smov 4  }
  0x27   : > { %1382 = dma.hbm_to_vmem [thread:$0]  (!%p1833_p6), %s2173_s1, 256, %s1826_s28, [#allocation9], %s1738_s27, %s1738_s27, %s1739_s30  }
  0x28   : > { %s1529_s12 = scalar_lea.hbm %s2175_s3, 256 }
  0x29   : > { %p1530_p5 = scmp.ne.s32.totalorder %s2175_s3, %s1529_s12  ;;  %p1536_p12 = scmp.lt.u32.totalorder %s1529_s12, %s2175_s3 }
  0x2b   : > { %p1532_p10 = pnand %p1530_p5, %p1849_p8 }
  0x2d   : > { %p1533_p11 = pneg %p1532_p10 }
  0x2f   : > { %p1538_p13 = pnand %p1536_p12, %p1533_p11 }
  0x31   : > { %1541 = shalt.err (!%p1538_p13)
}
  0x32   : > { %s1542_s28 = scalar_lea.vmem %s1837_s6, 256  ;;  %p1550_p7 = scmp.lt.s32.totalorder %s1837_s6, %s1837_s6 }
  0x33   : > { %p1543_p0 = scmp.ne.s32.totalorder %s1837_s6, %s1542_s28  ;;  %p1551_p9 = scmp.lt.s32.totalorder %s1542_s28, %s1542_s28 }
  0x35   : > { %p1545_p2 = pnand %p1543_p0, %p1849_p8  ;;  %p1552_p5 = por %p1551_p9, %p1550_p7 }
  0x37   : > { %p1546_p4 = pneg %p1545_p2 }
  0x39   : > { %p1553_p10 = pnand %p1552_p5, %p1546_p4 }
  0x3b   : > { %1556 = shalt.err (!%p1553_p10)
}
  0x3c   : > { %1388 = dma.hbm_to_vmem [thread:$0]  (!%p1833_p6), %s2175_s3, 256, %s1837_s6, [#allocation12], %s1738_s27, %s1738_s27, %s1739_s30  }
  0x3d   : > { %s1557_s12 = scalar_lea.hbm %s2174_s2, 16 }
  0x3e   : > { %p1558_p11 = scmp.ne.s32.totalorder %s2174_s2, %s1557_s12  ;;  %p1564_p0 = scmp.lt.u32.totalorder %s1557_s12, %s2174_s2 }
  0x40   : > { %p1560_p12 = pnand %p1558_p11, %p1849_p8 }
  0x42   : > { %p1561_p13 = pneg %p1560_p12 }
  0x44   : > { %p1566_p2 = pnand %p1564_p0, %p1561_p13 }
  0x46   : > { %1569 = shalt.err (!%p1566_p2)
}
  0x47   : > { %s1570_s28 = scalar_lea.vmem %s205_s8, 16  ;;  %s1577_s6 = scalar_lea.vmem %s205_s8, 32 }
  0x48   : > { %p1571_p4 = scmp.ne.s32.totalorder %s205_s8, %s1570_s28  ;;  %p1578_p5 = scmp.lt.s32.totalorder %s205_s8, %s205_s8 }
  0x49   : > { %p1579_p10 = scmp.lt.s32.totalorder %s1577_s6, %s1570_s28 }
  0x4a   : > { %p1573_p7 = pnand %p1571_p4, %p1849_p8 }
  0x4b   : > { %p1580_p3 = por %p1579_p10, %p1578_p5 }
  0x4c   : > { %p1574_p9 = pneg %p1573_p7 }
  0x4e   : > { %p1581_p1 = pnand %p1580_p3, %p1574_p9 }
  0x50   : > { %1584 = shalt.err (!%p1581_p1)
}
  0x51   : > { %1385 = dma.hbm_to_vmem [thread:$0]  (!%p1833_p6), %s2174_s2, 16, %s205_s8, [#allocation9]  }
  0x52   : > { %s1740_s7 = smov [#allocation13]   ;;  %s1585_s12 = scalar_lea.hbm %s2176_s4, 16 }
  0x53   : > { %s228_s9 = sshll.u32 %s1740_s7, 4  ;;  %p1586_p11 = scmp.ne.s32.totalorder %s2176_s4, %s1585_s12  ;;  %s229_s9 = int_to_ptr.vmem [resolvable:$true] %s228_s9 }
  0x54   : > { %p1592_p12 = scmp.lt.u32.totalorder %s1585_s12, %s2176_s4 }
  0x55   : > { %p1588_p1 = pnand %p1586_p11, %p1849_p8 }
  0x57   : > { %p1589_p3 = pneg %p1588_p1 }
  0x59   : > { %p1594_p13 = pnand %p1592_p12, %p1589_p3 }
  0x5b   : > { %1597 = shalt.err (!%p1594_p13)
}
  0x5c   : > { %s1598_s8 = scalar_lea.vmem %s229_s9, 16  ;;  %s1605_s28 = scalar_lea.vmem %s229_s9, 32 }
  0x5d   : > { %p1599_p0 = scmp.ne.s32.totalorder %s229_s9, %s1598_s8  ;;  %p1606_p7 = scmp.lt.s32.totalorder %s229_s9, %s229_s9 }
  0x5e   : > { %p1607_p9 = scmp.lt.s32.totalorder %s1605_s28, %s1598_s8 }
  0x5f   : > { %p1601_p2 = pnand %p1599_p0, %p1849_p8 }
  0x60   : > { %p1608_p5 = por %p1607_p9, %p1606_p7 }
  0x61   : > { %p1602_p4 = pneg %p1601_p2 }
  0x63   : > { %p1609_p10 = pnand %p1608_p5, %p1602_p4 }
  0x65   : > { %1612 = shalt.err (!%p1609_p10)
}
  0x66   : > { %1391 = dma.hbm_to_vmem [thread:$0]  (!%p1833_p6), %s2176_s4, 16, %s229_s9, [#allocation12]  }
  0x67   : > { %s1204_s14 = sadd.s32 4294967294, %s1733_s23   ;;  %s35_s30 = sadd.s32 1, %s1729_s22 }
  0x68   : > { %p37_p8 = scmp.ge.s32.totalorder %s35_s30, 2  ;;  %s42_s29 = sadd.s32 1, %s1721_s20 }
  0x69   : > { %p49_p11 = scmp.ne.s32.totalorder %s1721_s20, %s1717_s19  ;;  %p50_p1 = scmp.eq.s32.totalorder %s1733_s23, 0 }
  0x6a   : > { %s2203_s30 = smov (%p37_p8, %s35_s30), 0  ;;  %p55_p12 = scmp.ne.s32.totalorder %s1717_s19, %s1713_s18 }
  0x6b   : > { %p1938_p3 = por %p50_p1, %p49_p11  ;;  %s39_s9 = ssub.s32 %s1729_s22, %s2203_s30 }
  0x6c   : > { %p165_p6 = scmp.eq.s32.totalorder %s1203_s24, 1  ;;  %p40_p13 = scmp.eq.s32.totalorder %s39_s9, 0 }
  0x6d   : > { %p2187_p0 = scmp.ne.s32.totalorder %s2182_s25, 0  ;;  %p171_p7 = scmp.eq.s32.totalorder %s1204_s14, 1 }
  0x6e   : > { %p1954_p4 = por %p165_p6, %p49_p11  ;;  %p1404_p5 = scmp.lt.s32.totalorder %s1733_s23, 2 }
  0x6f   : > { %p1950_p2 = por %p2187_p0, %p55_p12  ;;  %p1961_p9 = por %p171_p7, %p55_p12 }
  0x70   : > { %s2189_s11 = scalar_select %p1954_p4, 1, 0 }
  0x71   : > { %s1959_s12 = scalar_select %p40_p13, %s1721_s20, %s42_s29  }
  0x72   : > { %s2190_s13 = scalar_select %p1961_p9, 1, 0 }
  0x73   : > { %s239_s15 = sand.u32 1, %s1721_s20   ;;  %s1212_s24 = sshll.u32 %s1729_s22, 7 }
  0x74   : > { %s1211_s16 = sshll.u32 %s239_s15, 3  ;;  %s1971_s28 = scalar_lea.hbm %s2172_s0, %s1212_s24 }
  0x75   : > { %s243_s6 = scalar_lea.vmem [#allocation5], %s1211_s16  ;;  %p1975_p10 = pnand %p1404_p5, %p1938_p3 }
  0x76   : > { %s250_s27 = sshll.u32 %s243_s6, 4  ;;  %s240_s29 = scalar_lea.sflag [#allocation6], %s239_s15  ;;  %s1979_s27 = int_to_ptr.vmem [resolvable:$true] %s250_s27 }
  0x77   : > { %s1613_s9 = scalar_lea.hbm %s1971_s28, 128  ;;  %p1615_p11 = pneg %p1975_p10 }
  0x78   : > { %p1614_p8 = scmp.ne.s32.totalorder %s1971_s28, %s1613_s9  ;;  %s1618_s7 = scalar_lea.hbm %s2172_s0, 256 }
  0x79   : > { %p1619_p3 = scmp.lt.u32.totalorder %s1971_s28, %s2172_s0  ;;  %p1620_p6 = scmp.lt.u32.totalorder %s1618_s7, %s1613_s9 }
  0x7a   : > { %p1616_p1 = pnand %p1615_p11, %p1614_p8  ;;  %p1622_p0 = scmp.lt.u32.totalorder %s1613_s9, %s1971_s28 }
  0x7b   : > { %p1621_p13 = por %p1620_p6, %p1619_p3 }
  0x7c   : > { %p1617_p12 = pneg %p1616_p1 }
  0x7d   : > { %p1623_p7 = por %p1622_p0, %p1621_p13 }
  0x7f   : > { %p1624_p5 = pnand %p1623_p7, %p1617_p12 }
  0x81   : > { %1627 = shalt.err (!%p1624_p5)
}
  0x82   : > { %s1628_s15 = scalar_lea.vmem %s1979_s27, 128  ;;  %s1741_s6 = smov [#allocation5]  }
  0x83   : > { %p1629_p8 = scmp.ne.s32.totalorder %s1979_s27, %s1628_s15  ;;  %s1633_s24 = sshll.u32 %s1741_s6, 4  ;;  %s1634_s24 = int_to_ptr.vmem [resolvable:$false] %s1633_s24 }
  0x84   : > { %s1635_s16 = scalar_lea.vmem %s1634_s24, 256  ;;  %p1636_p4 = scmp.lt.s32.totalorder %s1979_s27, %s1634_s24 }
  0x85   : > { %p1631_p1 = pnand %p1629_p8, %p1615_p11  ;;  %p1637_p3 = scmp.lt.s32.totalorder %s1635_s16, %s1628_s15 }
  0x87   : > { %p1632_p9 = pneg %p1631_p1  ;;  %p1638_p6 = por %p1637_p3, %p1636_p4 }
  0x89   : > { %p1639_p13 = pnand %p1638_p6, %p1632_p9 }
  0x8b   : > { %1642 = shalt.err (!%p1639_p13)
}
  0x8c   : > { %1395 = dma.hbm_to_vmem [thread:$0]  (!%p1975_p10), %s1971_s28, 128, %s1979_s27, %s240_s29  }
  0x8d   : > { %p2192_p12 = scmp.ne.s32.totalorder %s2183_s26, 0 }
  0x8e   : > { %s2009_s9 = sand.u32 (!%p2192_p12), 1, %s1717_s19  }
  0x8f   : > { %259 = sbr.rel (%p2192_p12) target bundleno = 1578 (0x62a), region = 40  ;;  %s1214_s7 = sshll.u32 (!%p2192_p12), %s2009_s9, 3 }
  0x90   : > { %s262_s17 = scalar_lea.sflag (!%p2192_p12), [#allocation6], %s2009_s9  ;;  %s265_s8 = scalar_lea.vmem (!%p2192_p12), [#allocation5], %s1214_s7 }
  0x96   : > { %1696 = dma.done.wait (%p1950_p2), %s262_s17, 128  }
  0x97   : > { %1698 = vsyncadd (%p1950_p2), %s262_s17, 4294967168  ;;  %p2193_p4 = scmp.ne.s32.totalorder %s2182_s25, 0 }
  0x99   : > { %1700 = dma.done.wait (%p2193_p4), [#allocation9], 272  }
  0x9a   : > { %1702 = vsyncadd (%p2193_p4), [#allocation9], 4294967024 }
  0x9b   : > { %1704 = dma.done.wait (%p2193_p4), [#allocation12], 272  }
  0x9c   : > { %1706 = vsyncadd (%p2193_p4), [#allocation12], 4294967024  ;;  %v1742_v0 = vmov 0.0   ;;  %vm1743_vm0 = vmmov 0   ;;  %v1474_v1 = vld [vmem:[#allocation8] sm:$0xff]   ;;  %v1475_v2 = vld [vmem:[#allocation8 + $0x8] sm:$0xff]  }
  0x9d   : > { %1279 = vmatprep.subr.bf16.mxu0 %v1742_v0  ;;  %1283 = vmatprep.mubr.msk.bf16.mxu0 %vm1743_vm0, %v1742_v0  ;;  %s1744_s26 = smov 96   ;;  %v1476_v3 = vld [vmem:[#allocation8] sm:$0xff]   ;;  %v1477_v4 = vld [vmem:[#allocation8 + $0x8] sm:$0xff]   ;;  %v313_v5 = vld [vmem:[%s265_s8] sm:$0xff]  ;;  %vm338_vm1 = vcmask 261120   ;;  %vm383_vm2 = vcmask 257024  }
  0x9e   : > { %1287 = vmatprep.subr.bf16.mxu1 %v1742_v0  ;;  %1291 = vmatprep.mubr.msk.bf16.mxu1 %vm1743_vm0, %v1742_v0  ;;  %v1224_v6 = vld [vmem:[#allocation10] ss:$0 sm:$0xff]  ;;  %v2034_v7 = vpack.c.bf16 %v313_v5, %v313_v5  ;;  %s1745_s25 = smov 120   ;;  %v1479_v18 = vld [vmem:[#allocation8] sm:$0xff]   ;;  %s1746_s10 = smov 64   ;;  %vm535_vm3 = vcmask 64512  }
  0x9f   : > { %405 = vrot.lane.b32.xlu0 %v1474_v1, %s1744_s26  ;;  %1280 = vmatpush3.bf16.msra.mxu0 %v1476_v3  ;;  %s1747_s28 = smov 104   ;;  %s1748_s27 = smov 112   ;;  %v1481_v31 = vld [vmem:[#allocation8 + $0x8] sm:$0xff]   ;;  %vm595_vm4 = vcmask 1043456   ;;  %vm996_vm5 = vcmask 130048   ;;  %vm999_vm6 = vcmask 195584  }
  0xa0   : > { %1281 = vmatprep.subr.bf16.mxu0 %v1742_v0  ;;  %411 = vrot.lane.b32.xlu1 %v1224_v6, %s1744_s26  ;;  %s1749_s14 = smov 8   ;;  %s1750_s29 = smov 16  }
  0xa1   : > { %s1751_s15 = smov 24   ;;  %s1248_s6 = sshll.u32 %s1725_s21, 7 }
  0xa2   : > { %s307_s24 = scalar_lea.vmem [#allocation14], %s1214_s7  ;;  %s1070_s21 = scalar_lea.sflag [#allocation7], %s2009_s9 }
  0xa3   : > { %407 = vrot.lane.b32.xlu0 %v1475_v2, %s1744_s26  ;;  %1282 = vmatpush3.bf16.msra.mxu0 %v1477_v4  ;;  %s1084_s16 = sshll.u32 %s307_s24, 4  ;;  %s2122_s26 = scalar_lea.hbm %s2177_s5, %s1248_s6  ;;  %s2124_s16 = int_to_ptr.vmem [resolvable:$true] %s1084_s16 }
  0xa4   : > { %1295 = vmatprep.subr.bf16.mxu0 %v1742_v0  ;;  %s1643_s7 = scalar_lea.vmem %s2124_s16, 128  ;;  %p2194_p9 = scmp.ne.s32.totalorder %s2189_s11, 0 }
  0xa5   : > { %p1644_p2 = scmp.ne.s32.totalorder %s2124_s16, %s1643_s7 }
  0xa6   : > { %1284 = vmatmul.mubr.msk.bf16.vlgmr.msra.gmra.mrb[0].mxu0 %vm338_vm1, %v2034_v7 }
  0xa7   : > { %1299 = vmatprep.mubr.msk.bf16.mxu0 %vm1743_vm0, %v1742_v0  ;;  %p1645_p10 = pnand %p1644_p2, %p2194_p9 }
  0xa9   : > { %p1646_p11 = pneg %p1645_p10 }
 0x111   : > { %v406_v8 = vpop.permute.xlu0 %405 }
 0x112   : > { %1288 = vmatpush3.bf16.msra.mxu1 %v406_v8  ;;  %v412_v19 = vpop.permute.xlu1 %411 }
 0x113   : > { %1289 = vmatprep.subr.bf16.mxu1 %v1742_v0 }
 0x115   : > { %v408_v9 = vpop.permute.xlu0 %407 }
 0x116   : > { %1290 = vmatpush3.bf16.msra.mxu1 %v408_v9 }
 0x117   : > { %1303 = vmatprep.subr.bf16.mxu1 %v1742_v0 }
 0x119   : > { %1292 = vmatmul.mubr.msk.bf16.vlgmr.msra.gmra.mrb[0].mxu1 %vm338_vm1, %v2034_v7 }
 0x11a   : > { %1305 = vmatprep.mubr.msk.bf16.mxu1 %vm1743_vm0, %v1742_v0 }
 0x179   : > { %v376_v10 = vpop.f32.mrb[0].mxu0 }
 0x17a   : > { %v377_v11 = vadd.f32 %v1224_v6, %v376_v10  ;;  %v1285_v12 = vpop.f32.mrb[1].mxu0 }
 0x17b   : > { %v379_v13 = vpop.f32.mrb[2].mxu0 }
 0x17c   : > { %v382_v14 = vpack.c.bf16 %v377_v11, %v377_v11  ;;  %v1286_v15 = vpop.f32.mrb[3].mxu0 }
 0x17e   : > { %384 = vst.msk [vmem:[#allocation2] sm:$0xf] %vm383_vm2, %v382_v14 }
 0x185   : > { %v532_v16 = vld [vmem:[#allocation2] sm:$0xf] }
 0x186   : > { %v1234_v17 = vcombine.low %v532_v16, %v532_v16 }
 0x188   : > { %645 = vrot.lane.b32.xlu0 %v1234_v17, %s1745_s25 }
 0x18c   : > { %476 = vrot.lane.b32.xlu0 %v1479_v18, %s1746_s10 }
 0x1ec   : > { %v448_v20 = vpop.f32.mrb[0].mxu1 }
 0x1ed   : > { %v449_v21 = vadd.f32 %v448_v20, %v412_v19  ;;  %v1293_v22 = vpop.f32.mrb[1].mxu1 }
 0x1ee   : > { %v451_v23 = vpop.f32.mrb[2].mxu1 }
 0x1ef   : > { %v454_v24 = vpack.c.bf16 %v449_v21, %v449_v21  ;;  %v1294_v25 = vpop.f32.mrb[3].mxu1 }
 0x1f1   : > { %455 = vst.msk [vmem:[#allocation3] sm:$0xf] %vm383_vm2, %v454_v24 }
 0x1f8   : > { %v533_v26 = vld [vmem:[#allocation3] sm:$0xf] }
 0x1f9   : > { %v540_v27 = vsel %vm535_vm3, %v533_v26, 0  ;;  %v1235_v28 = vcombine.low %v533_v26, %v533_v26 }
 0x1fa   : > { %1304 = vmatpush3.bf16.xpose.msra.mxu1 %v540_v27  ;;  %v646_v29 = vpop.permute.xlu0 %645 }
 0x1fb   : > { %650 = vrot.lane.b32.xlu1 %v1235_v28, %s1745_s25  ;;  %875 = vrot.lane.b32.xlu0 %v1235_v28, %s1747_s28 }
 0x1fc   : > { %1315 = vmatprep.subr.bf16.mxu1 %v1742_v0 }
 0x1fe   : > { %v477_v30 = vpop.permute.xlu0 %476 }
 0x1ff   : > { %764 = vrot.lane.b32.xlu1 %v1235_v28, %s1748_s27  ;;  %873 = vrot.lane.b32.xlu0 %v1234_v17, %s1747_s28 }
 0x200   : > { %1296 = vmatpush3.bf16.msra.mxu0 %v477_v30 }
 0x201   : > { %1306 = vmatmul.mubr.msk.bf16.vlgmr.msra.gmra.mrb[4].mxu1 %vm535_vm3, %v532_v16  ;;  %1297 = vmatprep.subr.bf16.mxu0 %v1742_v0 }
 0x202   : > { %1317 = vmatprep.mubr.msk.bf16.mxu1 %vm1743_vm0, %v1742_v0 }
 0x203   : > { %762 = vrot.lane.b32.xlu1 %v1234_v17, %s1748_s27 }
 0x207   : > { %478 = vrot.lane.b32.xlu1 %v1481_v31, %s1746_s10 }
 0x20b   : > { %482 = vrot.lane.b32.xlu1 %v1224_v6, %s1746_s10 }
 0x26d   : > { %v651_v32 = vpop.permute.xlu1 %650  ;;  %v876_v38 = vpop.permute.xlu0 %875 }
 0x26e   : > { %v656_v33 = vsel %vm535_vm3, %v651_v32, 0  ;;  %v881_v39 = vsel %vm535_vm3, %v876_v38, 0 }
 0x26f   : > { %1316 = vmatpush3.bf16.xpose.msra.mxu1 %v656_v33 }
 0x270   : > { %1327 = vmatprep.subr.bf16.mxu1 %v1742_v0 }
 0x271   : > { %v765_v34 = vpop.permute.xlu1 %764  ;;  %v874_v40 = vpop.permute.xlu0 %873 }
 0x272   : > { %v770_v36 = vsel %vm535_vm3, %v765_v34, 0 }
 0x275   : > { %v763_v35 = vpop.permute.xlu1 %762 }
 0x276   : > { %1318 = vmatmul.mubr.msk.bf16.vlgmr.msra.gmra.mrb[8].mxu1 %vm535_vm3, %v646_v29 }
 0x277   : > { %1328 = vmatpush3.bf16.xpose.msra.mxu1 %v770_v36  ;;  %1329 = vmatprep.mubr.msk.bf16.mxu1 %vm1743_vm0, %v1742_v0 }
 0x278   : > { %1339 = vmatprep.subr.bf16.mxu1 %v1742_v0 }
 0x279   : > { %v479_v37 = vpop.permute.xlu1 %478 }
 0x27a   : > { %1298 = vmatpush3.bf16.msra.mxu0 %v479_v37 }
 0x27b   : > { %1309 = vmatprep.subr.bf16.mxu0 %v1742_v0 }
 0x27d   : > { %1300 = vmatmul.mubr.msk.bf16.vlgmr.msra.gmra.mrb[4].mxu0 %vm338_vm1, %v2034_v7  ;;  %v483_v51 = vpop.permute.xlu1 %482 }
 0x27e   : > { %1330 = vmatmul.mubr.msk.bf16.vlgmr.msra.gmra.mrb[12].mxu1 %vm535_vm3, %v763_v35  ;;  %1311 = vmatprep.mubr.msk.bf16.mxu0 %vm1743_vm0, %v1742_v0 }
 0x27f   : > { %1340 = vmatpush3.bf16.xpose.msra.mxu1 %v881_v39  ;;  %1341 = vmatprep.mubr.msk.bf16.mxu1 %vm1743_vm0, %v1742_v0 }
 0x280   : > { %1351 = vmatprep.subr.bf16.mxu1 %v1742_v0 }
 0x286   : > { %1342 = vmatmul.mubr.msk.bf16.vlgmr.msra.gmra.mrb[16].mxu1 %vm535_vm3, %v874_v40 }
 0x287   : > { %1355 = vmatprep.mubr.msk.bf16.mxu1 %vm1743_vm0, %v1742_v0 }
 0x2d4   : > { %v576_v41 = vpop.f32.mrb[4].mxu1 }
 0x2d5   : > { %v1307_v42 = vpop.f32.mrb[5].mxu1  ;;  %v582_v43 = vsel %vm535_vm3, %v576_v41, -inf }
 0x2d6   : > { %583 = vmax.xlane.f32.xlu0 %v582_v43  ;;  %v579_v44 = vpop.f32.mrb[6].mxu1 }
 0x2d7   : > { %v1308_v45 = vpop.f32.mrb[7].mxu1 }
 0x349   : > { %v692_v46 = vpop.f32.mrb[8].mxu1 }
 0x34a   : > { %v1319_v47 = vpop.f32.mrb[9].mxu1  ;;  %v698_v48 = vsel %vm535_vm3, %v692_v46, -inf }
 0x34b   : > { %699 = vmax.xlane.f32.xlu1 %v698_v48  ;;  %v695_v49 = vpop.f32.mrb[10].mxu1 }
 0x34c   : > { %v1320_v50 = vpop.f32.mrb[11].mxu1 }
 0x34d   : > { %v1484_v50 = vld [vmem:[#allocation11 + $0x8] sm:$0xff]  }
 0x350   : > { %v519_v52 = vpop.f32.mrb[4].mxu0 }
 0x351   : > { %v806_v53 = vpop.f32.mrb[12].mxu1  ;;  %v520_v54 = vadd.f32 %v519_v52, %v483_v51  ;;  %v1301_v55 = vpop.f32.mrb[5].mxu0 }
 0x352   : > { %v1331_v56 = vpop.f32.mrb[13].mxu1  ;;  %v812_v57 = vsel %vm535_vm3, %v806_v53, -inf  ;;  %v522_v58 = vpop.f32.mrb[6].mxu0 }
 0x353   : > { %813 = vmax.xlane.f32.xlu0 %v812_v57  ;;  %v809_v59 = vpop.f32.mrb[14].mxu1  ;;  %v525_v60 = vpack.c.bf16 %v520_v54, %v520_v54  ;;  %v1302_v61 = vpop.f32.mrb[7].mxu0 }
 0x354   : > { %v1332_v62 = vpop.f32.mrb[15].mxu1 }
 0x355   : > { %526 = vst.msk [vmem:[#allocation4] sm:$0xf] %vm383_vm2, %v525_v60 }
 0x359   : > { %v917_v63 = vpop.f32.mrb[16].mxu1 }
 0x35a   : > { %v1343_v1 = vpop.f32.mrb[17].mxu1  ;;  %v923_v2 = vsel %vm535_vm3, %v917_v63, -inf }
 0x35b   : > { %924 = vmax.xlane.f32.xlu0 %v923_v2  ;;  %v920_v3 = vpop.f32.mrb[18].mxu1 }
 0x35c   : > { %v1344_v4 = vpop.f32.mrb[19].mxu1  ;;  %v534_v5 = vld [vmem:[#allocation4] sm:$0xf] }
 0x35d   : > { %v1237_v6 = vcombine.low %v534_v5, %v534_v5  ;;  %v597_v7 = vsel %vm595_vm4, %v534_v5, 0 }
 0x35e   : > { %1310 = vmatpush3.bf16.msra.mxu0 %v597_v7 }
 0x35f   : > { %711 = vrot.lane.b32.xlu1 %v1237_v6, %s1745_s25  ;;  %1321 = vmatprep.subr.bf16.mxu0 %v1742_v0  ;;  %s1752_s25 = smov [#allocation14]  }
 0x360   : > { %s1647_s10 = sshll.u32 %s1752_s25, 4  ;;  %s1648_s10 = int_to_ptr.vmem [resolvable:$false] %s1647_s10 }
 0x361   : > { %p1650_p0 = scmp.lt.s32.totalorder %s2124_s16, %s1648_s10 }
 0x363   : > { %v584_v8 = vpop.xlane.xlu0 %583  ;;  %933 = vrot.lane.b32.xlu1 %v1237_v6, %s1747_s28  ;;  %s1649_s28 = scalar_lea.vmem %s1648_s10, 256 }
 0x364   : > { %v585_v9 = vsub.f32 %v576_v41, %v584_v8  ;;  %p1651_p7 = scmp.lt.s32.totalorder %s1649_s28, %s1643_s7 }
 0x366   : > { %v586_v10 = vmul.f32 1.442695, %v585_v9  ;;  %p1652_p5 = por %p1651_p7, %p1650_p0 }
 0x368   : > { %1485 = vpow2.f32 %v586_v10  ;;  %p1653_p8 = pnand %p1652_p5, %p1646_p11 }
 0x371   : > { %822 = vrot.lane.b32.xlu0 %v1237_v6, %s1748_s27 }
 0x372   : > { %v1486_v11 = vpop.eup %1485 }
 0x373   : > { %v591_v12 = vpack.c.bf16 %v1486_v11, %v1486_v11  ;;  %v588_v28 = vsel %vm535_vm3, %v1486_v11, 0.0 }
 0x375   : > { %1312 = vmatmul.mubr.msk.bf16.vlgmr.msra.gmra.mrb[8].mxu0 %vm535_vm3, %v591_v12 }
 0x376   : > { %1323 = vmatprep.mubr.msk.bf16.mxu0 %vm1743_vm0, %v1742_v0 }
 0x3d8   : > { %v700_v13 = vpop.xlane.xlu1 %699 }
 0x3d9   : > { %v701_v14 = vsub.f32 %v692_v46, %v700_v13  ;;  %v1483_v46 = vld [vmem:[#allocation11] sm:$0xff]  }
 0x3da   : > { %1352 = vmatpush3.bf16.msra.mxu1 %v1483_v46 }
 0x3db   : > { %v702_v15 = vmul.f32 1.442695, %v701_v14  ;;  %1353 = vmatprep.subr.bf16.mxu1 %v1742_v0  ;;  %v1243_v14 = vld [vmem:[#allocation13] ss:$0 sm:$0xff] }
 0x3dc   : > { %v712_v16 = vpop.permute.xlu1 %711 }
 0x3dd   : > { %1487 = vpow2.f32 %v702_v15  ;;  %v717_v17 = vsel %vm595_vm4, %v712_v16, 0 }
 0x3de   : > { %1322 = vmatpush3.bf16.msra.mxu0 %v717_v17  ;;  %1354 = vmatpush3.bf16.msra.mxu1 %v1484_v50 }
 0x3df   : > { %1333 = vmatprep.subr.bf16.mxu0 %v1742_v0 }
 0x3e0   : > { %v814_v18 = vpop.xlane.xlu0 %813  ;;  %v934_v31 = vpop.permute.xlu1 %933 }
 0x3e1   : > { %v815_v19 = vsub.f32 %v806_v53, %v814_v18  ;;  %v939_v34 = vsel %vm595_vm4, %v934_v31, 0 }
 0x3e3   : > { %v816_v20 = vmul.f32 1.442695, %v815_v19 }
 0x3e5   : > { %1489 = vpow2.f32 %v816_v20 }
 0x3e7   : > { %v1488_v21 = vpop.eup %1487 }
 0x3e8   : > { %v925_v22 = vpop.xlane.xlu0 %924  ;;  %v704_v23 = vsel %vm535_vm3, %v1488_v21, 0.0  ;;  %v707_v24 = vpack.c.bf16 %v1488_v21, %v1488_v21 }
 0x3e9   : > { %v926_v25 = vsub.f32 %v917_v63, %v925_v22  ;;  %705 = vadd.xlane.f32.xlu1 %v704_v23 }
 0x3ea   : > { %1324 = vmatmul.mubr.msk.bf16.vlgmr.msra.gmra.mrb[12].mxu0 %vm535_vm3, %v707_v24 }
 0x3eb   : > { %v927_v26 = vmul.f32 1.442695, %v926_v25  ;;  %1335 = vmatprep.mubr.msk.bf16.mxu0 %vm1743_vm0, %v1742_v0 }
 0x3ec   : > { %v823_v27 = vpop.permute.xlu0 %822 }
 0x3ed   : > { %1491 = vpow2.f32 %v927_v26  ;;  %v828_v29 = vsel %vm595_vm4, %v823_v27, 0  ;;  %589 = vadd.xlane.f32.xlu1 %v588_v28 }
 0x3ee   : > { %1334 = vmatpush3.bf16.msra.mxu0 %v828_v29 }
 0x3ef   : > { %v1490_v30 = vpop.eup %1489  ;;  %1345 = vmatprep.subr.bf16.mxu0 %v1742_v0 }
 0x3f0   : > { %v818_v32 = vsel %vm535_vm3, %v1490_v30, 0.0  ;;  %v821_v33 = vpack.c.bf16 %v1490_v30, %v1490_v30 }
 0x3f1   : > { %819 = vadd.xlane.f32.xlu0 %v818_v32 }
 0x3f2   : > { %1336 = vmatmul.mubr.msk.bf16.vlgmr.msra.gmra.mrb[16].mxu0 %vm535_vm3, %v821_v33 }
 0x3f3   : > { %1346 = vmatpush3.bf16.msra.mxu0 %v939_v34  ;;  %1347 = vmatprep.mubr.msk.bf16.mxu0 %vm1743_vm0, %v1742_v0 }
 0x3f7   : > { %v1492_v35 = vpop.eup %1491 }
 0x3f8   : > { %v929_v36 = vsel %vm535_vm3, %v1492_v35, 0.0  ;;  %v932_v37 = vpack.c.bf16 %v1492_v35, %v1492_v35 }
 0x3f9   : > { %930 = vadd.xlane.f32.xlu0 %v929_v36 }
 0x3fa   : > { %1348 = vmatmul.mubr.msk.bf16.vlgmr.msra.gmra.mrb[20].mxu0 %vm535_vm3, %v932_v37 }
 0x448   : > { %v633_v38 = vpop.f32.mrb[8].mxu0 }
 0x449   : > { %v1313_v39 = vpop.f32.mrb[9].mxu0 }
 0x44a   : > { %v636_v40 = vpop.f32.mrb[10].mxu0 }
 0x44b   : > { %v1314_v41 = vpop.f32.mrb[11].mxu0 }
 0x476   : > { %v706_v42 = vpop.xlane.xlu1 %705 }
 0x477   : > { %1493 = vrcp.f32 %v706_v42 }
 0x47a   : > { %v590_v4 = vpop.xlane.xlu1 %589 }
 0x47e   : > { %v820_v43 = vpop.xlane.xlu0 %819 }
 0x47f   : > { %1495 = vrcp.f32 %v820_v43 }
 0x481   : > { %v1494_v44 = vpop.eup %1493 }
 0x486   : > { %v931_v51 = vpop.xlane.xlu0 %930 }
 0x487   : > { %1497 = vrcp.f32 %v931_v51 }
 0x488   : > { %1499 = vrcp.f32 %v590_v4 }
 0x489   : > { %v1496_v54 = vpop.eup %1495 }
 0x491   : > { %v1498_v61 = vpop.eup %1497 }
 0x492   : > { %v1500_v5 = vpop.eup %1499 }
 0x493   : > { %v640_v6 = vmul.f32 %v1500_v5, %v633_v38 }
 0x495   : > { %v641_v9 = vpack.c.bf16 %v640_v6, %v640_v6 }
 0x4bd   : > { %v753_v45 = vpop.f32.mrb[12].mxu0 }
 0x4be   : > { %v760_v47 = vmul.f32 %v1494_v44, %v753_v45  ;;  %v1325_v48 = vpop.f32.mrb[13].mxu0 }
 0x4bf   : > { %v756_v49 = vpop.f32.mrb[14].mxu0 }
 0x4c0   : > { %v761_v52 = vpack.c.bf16 %v760_v47, %v760_v47  ;;  %v1326_v53 = vpop.f32.mrb[15].mxu0 }
 0x4c2   : > { %985 = vrot.lane.b32.xlu0 %v761_v52, %s1749_s14 }
 0x4c5   : > { %v864_v55 = vpop.f32.mrb[16].mxu0 }
 0x4c6   : > { %v871_v56 = vmul.f32 %v1496_v54, %v864_v55  ;;  %v1337_v57 = vpop.f32.mrb[17].mxu0 }
 0x4c7   : > { %v867_v58 = vpop.f32.mrb[18].mxu0 }
 0x4c8   : > { %v872_v59 = vpack.c.bf16 %v871_v56, %v871_v56  ;;  %v1338_v60 = vpop.f32.mrb[19].mxu0 }
 0x4ca   : > { %988 = vrot.lane.b32.xlu1 %v872_v59, %s1750_s29 }
 0x4cd   : > { %v975_v62 = vpop.f32.mrb[20].mxu0 }
 0x4ce   : > { %v982_v63 = vmul.f32 %v1498_v61, %v975_v62  ;;  %v1349_v1 = vpop.f32.mrb[21].mxu0 }
 0x4cf   : > { %v978_v2 = vpop.f32.mrb[22].mxu0 }
 0x4d0   : > { %v983_v3 = vpack.c.bf16 %v982_v63, %v982_v63  ;;  %v1350_v0 = vpop.f32.mrb[23].mxu0 }
 0x4d2   : > { %991 = vrot.lane.b32.xlu1 %v983_v3, %s1751_s15 }
 0x534   : > { %v986_v7 = vpop.permute.xlu0 %985 }
 0x535   : > { %v995_v10 = vsel %vm535_vm3, %v641_v9, %v986_v7 }
 0x53c   : > { %v989_v8 = vpop.permute.xlu1 %988 }
 0x53d   : > { %v998_v11 = vsel %vm996_vm5, %v995_v10, %v989_v8 }
 0x544   : > { %v992_v12 = vpop.permute.xlu1 %991 }
 0x545   : > { %v1001_v13 = vsel %vm999_vm6, %v998_v11, %v992_v12 }
 0x546   : > { %1356 = vmatmul.mubr.msk.bf16.vlgmr.msra.gmra.mrb[20].mxu1 %vm338_vm1, %v1001_v13 }
 0x619   : > { %v1062_v15 = vpop.f32.mrb[20].mxu1 }
 0x61a   : > { %v1063_v16 = vadd.f32 %v1243_v14, %v1062_v15  ;;  %v1357_v17 = vpop.f32.mrb[21].mxu1 }
 0x61b   : > { %v1065_v18 = vpop.f32.mrb[22].mxu1 }
 0x61c   : > { %v1358_v19 = vpop.f32.mrb[23].mxu1  ;;  %1068 = vst.msk [vmem:[%s307_s24] sm:$0xff] %vm338_vm1, %v1063_v16 }
 0x61d   : > { %1656 = shalt.err (!%p1653_p8)
}
 0x61e   : > { %s1657_s9 = scalar_lea.hbm %s2122_s26, 128  ;;  %s1661_s29 = scalar_lea.hbm %s2177_s5, 256 }
 0x61f   : > { %p1658_p1 = scmp.ne.s32.totalorder %s2122_s26, %s1657_s9  ;;  %p1662_p13 = scmp.lt.u32.totalorder %s2122_s26, %s2177_s5 }
 0x620   : > { %p1663_p12 = scmp.lt.u32.totalorder %s1661_s29, %s1657_s9  ;;  %p1665_p2 = scmp.lt.u32.totalorder %s1657_s9, %s2122_s26 }
 0x621   : > { %p1659_p3 = pnand %p1658_p1, %p2194_p9 }
 0x622   : > { %p1664_p4 = por %p1663_p12, %p1662_p13 }
 0x623   : > { %p1660_p6 = pneg %p1659_p3 }
 0x624   : > { %p1666_p10 = por %p1665_p2, %p1664_p4 }
 0x626   : > { %p1667_p11 = pnand %p1666_p10, %p1660_p6 }
 0x628   : > { %1670 = shalt.err (!%p1667_p11)
}
 0x629   : > { %1377 = dma.vmem_to_hbm [thread:$0]  (%p2194_p9), %s2124_s16, 128, %s2122_s26, %s1070_s21  }
 0x62a PF: > { %s1096_s24 = sand.u32 1, %s1713_s18   ;;  %p2195_p0 = scmp.ne.s32.totalorder %s2190_s13, 0 }
 0x62b   : > { %p2196_p7 = scmp.ge.s32.totalorder %s1733_s23, 2  ;;  %s1097_s17 = scalar_lea.sflag [#allocation7], %s1096_s24 }
 0x62d   : > { %p1397_p5 = pnand %p2196_p7, %p2195_p0 }
 0x62f   : > { %1708 = dma.done.wait (!%p1397_p5), %s1097_s17, 128  }
 0x630   : > { %1710 = vsyncadd (!%p1397_p5), %s1097_s17, 4294967168  ;;  %s23_s23 = sadd.s32 1, %s1733_s23   ;;  %s2197_s18 = smov %s1717_s19 }
 0x631   : > { %p20_p8 = scmp.ge.s32.totalorder %s23_s23, 4   ;;  %s2198_s19 = smov %s1721_s20 }
 0x632   : > { %s2199_s20 = smov %s1959_s12  ;;  %s2200_s21 = smov %s1729_s22 }
 0x633   : > { %s2201_s22 = smov %s2203_s30  ;;  %22 = sbr.rel (!%p20_p8) target bundleno = 8 (0x8), region = 106 }
 0x63a   :  { %1102 = vsyncpa [#allocation6], 1 }
 0x63b   :  { %1104 = vsyncpa [#allocation6 + $0x1], 1 }
 0x63c   :  { %1105 = vsyncpa [#allocation9], 1 }
 0x63d   :  { %1106 = vsyncpa [#allocation12], 1 }
 0x63e   :  { %1107 = vsyncpa [#allocation7], 1 }
 0x63f   :  { %1109 = vsyncpa [#allocation7 + $0x1], 1 }

</bundles_post_ra>
